<compile_context>
chip_gen: v5e
topology: v5e:2x2
jax: 0.10.0
libtpu: 0.0.40
codegen_flags: <defaults>
</compile_context>

<pallas_src>
import jax
import jax.numpy as jnp
from jax import lax
from jax.experimental import pallas as pl
from jax.experimental.pallas import tpu as pltpu


def _dwconv_kernel(x_ref, w_ref, b_ref, o_ref):
    # x_ref: (1, TC, L) NCL tile   w_ref: (TC, 3)   b_ref: (TC, 1)   o_ref: (1, TC, L)
    x = x_ref[0]                                        # (TC, L)
    w = w_ref[...]                                      # (TC, 3)
    L = x.shape[1]
    pos = lax.broadcasted_iota(jnp.int32, x.shape, 1)   # lane index

    # tap k=0 reads x[l-1]  (zero-padded at l == 0)
    x_m1 = pltpu.roll(x, shift=1, axis=1)
    x_m1 = jnp.where(pos >= 1, x_m1, 0.0)
    # tap k=2 reads x[l+1]  (zero-padded at l == L-1)
    x_p1 = pltpu.roll(x, shift=L - 1, axis=1)
    x_p1 = jnp.where(pos <= L - 2, x_p1, 0.0)

    o_ref[0] = (w[:, 0:1] * x_m1 + w[:, 1:2] * x + w[:, 2:3] * x_p1) + b_ref[...]


def _channel_tile(C, L, itemsize=4, vmem_budget=4 << 20):
    """Largest multiple-of-8 divisor of C whose (in + out) block fits the VMEM budget."""
    if C % 8 != 0:
        return C                                        # no clean sublane tiling; use full C
    max_tc = max(8, (vmem_budget // (2 * L * itemsize)) // 8 * 8)
    tc = min(C, max_tc)
    while C % tc:
        tc -= 8
    return max(tc, 8)


def dwconv(x, weight, bias, *, kernel_size=3, stride=1):
    """Depthwise Conv1d forward, NCL layout, padding=1, groups=in_channels, bias=True.

    x:      (B, C, L)  float
    weight: (C, 1, K)  torch depthwise layout, or (C, K)
    bias:   (C,)
    """
    # TODO(synk): only the module's default config is implemented
    #             (kernel_size=3, stride=1, padding=1, out_channels == in_channels).
    assert kernel_size == 3 and stride == 1
    B, C, L = x.shape
    w = weight.reshape(C, kernel_size) if weight.ndim == 3 else weight
    assert w.shape == (C, kernel_size) and bias.shape == (C,)

    if x.dtype != jnp.float32:
        x = x.astype(jnp.float32)
    w = w.astype(jnp.float32)
    b = bias.astype(jnp.float32).reshape(C, 1)

    tc = _channel_tile(C, L)
    grid = (B, C // tc)

    return pl.pallas_call(
        _dwconv_kernel,
        out_shape=jax.ShapeDtypeStruct((B, C, L), jnp.float32),
        grid=grid,
        in_specs=[pl.BlockSpec((1, tc, L), lambda bi, ci: (bi, ci, 0)),
                  pl.BlockSpec((tc, kernel_size), lambda bi, ci: (ci, 0)),
                  pl.BlockSpec((tc, 1), lambda bi, ci: (ci, 0))],
        out_specs=pl.BlockSpec((1, tc, L), lambda bi, ci: (bi, ci, 0)),
        compiler_params=pltpu.CompilerParams(
            dimension_semantics=("parallel", "parallel")),
    )(x, w, b)


def _dwconv_ref(x, w, b):
    # pure-JAX reference: zero-pad by 1 along L, sum of shifted per-channel products.
    B, C, L = x.shape
    xp = jnp.pad(x, ((0, 0), (0, 0), (1, 1)))
    return (w[:, 0][None, :, None] * xp[:, :, 0:L]
            + w[:, 1][None, :, None] * xp[:, :, 1:L + 1]
            + w[:, 2][None, :, None] * xp[:, :, 2:L + 2]
            + b[None, :, None])


if __name__ == "__main__":
    key = jax.random.PRNGKey(0)
    kx, kw, kb = jax.random.split(key, 3)

    B, C, L, K = 2, 32, 128, 3            # lane-dense L, sublane-aligned C, small shapes
    x = jax.random.normal(kx, (B, C, L), jnp.float32)                  # NCL, like PyTorch
    weight = 0.2 * jax.random.normal(kw, (C, 1, K), jnp.float32)       # torch depthwise layout
    bias = 0.1 * jax.random.normal(kb, (C,), jnp.float32)

    y = dwconv(x, weight, bias)
    y = jax.block_until_ready(y)

    assert y.shape == (B, C, L)
    y_ref = _dwconv_ref(x, weight.reshape(C, K), bias)
    assert bool(jnp.isfinite(y).all())
    assert bool(jnp.allclose(y, y_ref, atol=1e-5, rtol=1e-5))
    print("KERNEL_OK")
</pallas_src>

<mosaic_0001>
module attributes {stable_mosaic.version = 11 : i64} {
  func.func @_dwconv_kernel(%arg0: i32, %arg1: i32, %arg2: memref<1x32x128xf32, #tpu.memory_space<vmem>>, %arg3: memref<32x3xf32, #tpu.memory_space<vmem>>, %arg4: memref<32x1xf32, #tpu.memory_space<vmem>>, %arg5: memref<1x32x128xf32, #tpu.memory_space<vmem>>) attributes {dimension_semantics = [#tpu.dimension_semantics<parallel>, #tpu.dimension_semantics<parallel>], iteration_bounds = array<i64: 2, 1>, scalar_prefetch = 0 : i64, scratch_operands = 0 : i64, tpu.core_type = #tpu.core_type<tc>, window_params = [{transform_indices = @transform_0, window_bounds = array<i64: 1, 32, 128>}, {transform_indices = @transform_1, window_bounds = array<i64: 32, 3>}, {transform_indices = @transform_2, window_bounds = array<i64: 32, 1>}, {transform_indices = @transform_3, window_bounds = array<i64: 1, 32, 128>}]} {
    %c0 = arith.constant 0 : index
    %c0_0 = arith.constant 0 : index
    %c0_1 = arith.constant 0 : index
    %0 = vector.load %arg2[%c0, %c0_0, %c0_1] : memref<1x32x128xf32, #tpu.memory_space<vmem>>, vector<1x32x128xf32>
    %1 = vector.shape_cast %0 : vector<1x32x128xf32> to vector<32x128xf32>
    %c0_2 = arith.constant 0 : index
    %c0_3 = arith.constant 0 : index
    %2 = vector.load %arg3[%c0_2, %c0_3] : memref<32x3xf32, #tpu.memory_space<vmem>>, vector<32x3xf32>
    %3 = tpu.iota {dimensions = array<i32: 1>} : vector<32x128xi32>
    %c1_i32 = arith.constant 1 : i32
    %4 = tpu.dynamic_rotate %1 by %c1_i32 dim 1 : vector<32x128xf32>, i32 -> vector<32x128xf32>
    %c1_i32_4 = arith.constant 1 : i32
    %5 = vector.broadcast %c1_i32_4 : i32 to vector<32x128xi32>
    %6 = arith.cmpi sge, %3, %5 : vector<32x128xi32>
    %cst = arith.constant 0.000000e+00 : f32
    %7 = vector.broadcast %cst : f32 to vector<32x128xf32>
    %8 = arith.select %6, %4, %7 : vector<32x128xi1>, vector<32x128xf32>
    %c127_i32 = arith.constant 127 : i32
    %9 = tpu.dynamic_rotate %1 by %c127_i32 dim 1 : vector<32x128xf32>, i32 -> vector<32x128xf32>
    %c126_i32 = arith.constant 126 : i32
    %10 = vector.broadcast %c126_i32 : i32 to vector<32x128xi32>
    %11 = arith.cmpi sle, %3, %10 : vector<32x128xi32>
    %cst_5 = arith.constant 0.000000e+00 : f32
    %12 = vector.broadcast %cst_5 : f32 to vector<32x128xf32>
    %13 = arith.select %11, %9, %12 : vector<32x128xi1>, vector<32x128xf32>
    %14 = vector.extract_strided_slice %2 {offsets = [0, 0], sizes = [32, 1], strides = [1, 1]} : vector<32x3xf32> to vector<32x1xf32>
    %15 = vector.broadcast %14 : vector<32x1xf32> to vector<32x128xf32>
    %16 = arith.mulf %15, %8 : vector<32x128xf32>
    %17 = vector.extract_strided_slice %2 {offsets = [0, 1], sizes = [32, 1], strides = [1, 1]} : vector<32x3xf32> to vector<32x1xf32>
    %18 = vector.broadcast %17 : vector<32x1xf32> to vector<32x128xf32>
    %19 = arith.mulf %18, %1 : vector<32x128xf32>
    %20 = arith.addf %16, %19 : vector<32x128xf32>
    %21 = vector.extract_strided_slice %2 {offsets = [0, 2], sizes = [32, 1], strides = [1, 1]} : vector<32x3xf32> to vector<32x1xf32>
    %22 = vector.broadcast %21 : vector<32x1xf32> to vector<32x128xf32>
    %23 = arith.mulf %22, %13 : vector<32x128xf32>
    %24 = arith.addf %20, %23 : vector<32x128xf32>
    %c0_6 = arith.constant 0 : index
    %c0_7 = arith.constant 0 : index
    %25 = vector.load %arg4[%c0_6, %c0_7] : memref<32x1xf32, #tpu.memory_space<vmem>>, vector<32x1xf32>
    %26 = vector.broadcast %25 : vector<32x1xf32> to vector<32x128xf32>
    %27 = arith.addf %24, %26 : vector<32x128xf32>
    %c0_8 = arith.constant 0 : index
    %c0_9 = arith.constant 0 : index
    %c0_10 = arith.constant 0 : index
    %28 = vector.load %arg5[%c0_8, %c0_9, %c0_10] : memref<1x32x128xf32, #tpu.memory_space<vmem>>, vector<1x32x128xf32>
    %29 = vector.shape_cast %28 : vector<1x32x128xf32> to vector<32x128xf32>
    %30 = vector.shape_cast %27 : vector<32x128xf32> to vector<1x32x128xf32>
    tpu.vector_store %arg5[%c0_8, %c0_9, %c0_10], %30 {strides = array<i32>} : memref<1x32x128xf32, #tpu.memory_space<vmem>>, vector<1x32x128xf32>,
    return
  }
  func.func @transform_0(%arg0: i32, %arg1: i32) -> (i32, i32, i32) {
    %c0_i32 = arith.constant 0 : i32
    %c0_i32_0 = arith.constant 0 : i32
    return %arg0, %arg1, %c0_i32 : i32, i32, i32
  }
  func.func @transform_1(%arg0: i32, %arg1: i32) -> (i32, i32) {
    %c0_i32 = arith.constant 0 : i32
    %c0_i32_0 = arith.constant 0 : i32
    return %arg1, %c0_i32 : i32, i32
  }
  func.func @transform_2(%arg0: i32, %arg1: i32) -> (i32, i32) {
    %c0_i32 = arith.constant 0 : i32
    %c0_i32_0 = arith.constant 0 : i32
    return %arg1, %c0_i32 : i32, i32
  }
  func.func @transform_3(%arg0: i32, %arg1: i32) -> (i32, i32, i32) {
    %c0_i32 = arith.constant 0 : i32
    %c0_i32_0 = arith.constant 0 : i32
    return %arg0, %arg1, %c0_i32 : i32, i32, i32
  }
}

</mosaic_0001>

<bundles_post_ra>
// kernel: tpu_custom_call.1
= control target key start
LH: loop header
LB: loop body
LE: loop exit
PB: predicated region body
PF: predicated region fallthrough
CT: control target
= control target key end

     0   :  { %8 = vsyncpa [#allocation3], 0  ;;  %s869_s0 = inlined_call_operand.vmem [shape: f32[2,32,128], index: 0, kind: input, shape index: {}]   ;;  %s870_s1 = inlined_call_operand.vmem [shape: f32[32,3], index: 1, kind: input, shape index: {}]   ;;  %s871_s2 = inlined_call_operand.vmem [shape: f32[32,1], index: 2, kind: input, shape index: {}]   ;;  %s872_s3 = inlined_call_operand.hbm [shape: f32[2,32,128], index: 3, kind: output, shape index: {}]  }
   0x1   :  { %10 = vsyncpa [#allocation3 + $0x1], 0  ;;  %s709_s12 = smov 0   ;;  %s711_s13 = smov 0  }
   0x2   :  { %s713_s14 = smov 0   ;;  %s715_s15 = smov 0  }
   0x3   :  { %s717_s16 = smov 0   ;;  %s719_s17 = smov 0  }
   0x4 LB: > { %s511_s18 = sadd.s32 4294967295, %s680_s17   ;;  %s512_s19 = sadd.s32 4294967294, %s680_s17   ;;  %s680_s17 = sphi %s719_s17, %s16_s17   ;;  %s676_s16 = sphi %s717_s16, %s879_s16   ;;  %s672_s15 = sphi %s715_s15, %s878_s15   ;;  %s668_s14 = sphi %s713_s14, %s877_s14   ;;  %s664_s13 = sphi %s711_s13, %s876_s13   ;;  %s660_s12 = sphi %s709_s12, %s875_s12  }
   0x5   : > { %s28_s20 = sadd.s32 1, %s676_s16  ;;  %s117_s21 = sadd.s32 1, %s668_s14 }
   0x6   : > { %p30_p0 = scmp.ge.s32.totalorder %s28_s20, 2  ;;  %p127_p1 = scmp.ne.s32.totalorder %s668_s14, %s664_s13 }
   0x7   : > { %p128_p2 = scmp.eq.s32.totalorder %s511_s18, 1  ;;  %p133_p3 = scmp.ne.s32.totalorder %s664_s13, %s660_s12 }
   0x8   : > { %s881_s20 = smov (%p30_p0, %s28_s20), 0  ;;  %p134_p5 = scmp.eq.s32.totalorder %s512_s19, 1 }
   0x9   : > { %p749_p4 = por %p128_p2, %p127_p1  ;;  %s112_s23 = ssub.s32 %s676_s16, %s881_s20 }
   0xa   : > { %p517_p6 = scmp.ge.s32.totalorder %s680_s17, 1  ;;  %p115_p7 = scmp.eq.s32.totalorder %s112_s23, 0 }
   0xb   : > { %p756_p8 = por %p134_p5, %p133_p3  ;;  %p183_p9 = scmp.lt.s32.totalorder %s680_s17, 3 }
   0xc   : > { %s762_s25 = scalar_select %p115_p7, %s668_s14, %s117_s21  }
   0xd   : > { %p184_p10 = pnand %p517_p6, %p183_p9 }
   0xe   : > { %p222_p11 = scmp.lt.s32.totalorder (!%p184_p10), %s672_s15, 1  ;;  %s683_s4 = smov (!%p184_p10), 1  }
   0xf   : > { %187 = sbr.rel (%p184_p10) target bundleno = 213 (0xd5), region = 32  ;;  %s684_s5 = smov (!%p184_p10), 127  }
  0x10   : > { %s527_s8 = sshll.u32 (!%p184_p10), %s672_s15, 5  ;;  %s622_s28 = scalar_lea.hbm (!%p184_p10), %s872_s3, 64 }
  0x11   : > { %s398_s11 = scalar_lea.hbm (!%p184_p10), %s872_s3, %s527_s8 }
  0x12   : > { %s401_s19 = sshll.u32 (!%p184_p10), %s398_s11, 4  ;;  %s402_s19 = int_to_ptr.hbm [resolvable:$true] %s401_s19 }
  0x13   : > { %s616_s21 = sshra.s32 (!%p184_p10), %s402_s19, 4  ;;  %s617_s21 = int_to_ptr.hbm [resolvable:$true] %s616_s21 }
  0x14   : > { %v682_v0 = vmov 0   ;;  %s223_s26 = scalar_select %p222_p11, %s672_s15, 1  ;;  %v248_v5 = vld [vmem:[%s870_s1] sm:$0xff]  ;;  %v250_v6 = vld [vmem:[%s870_s1 + $0x10] sm:$0xff]  ;;  %v251_v7 = vld [vmem:[%s870_s1 + $0x18] sm:$0xff]  ;;  %v685_v9 = vmov 1   ;;  %v252_v30 = vlaneseq }
  0x15   : > { %590 = vset.pattern.permute.xlu2 %v682_v0  ;;  %592 = vset.pattern.permute.xlu1 %v682_v0  ;;  %v249_v8 = vld [vmem:[%s870_s1 + $0x8] sm:$0xff]  ;;  %v686_v10 = vmov 2   ;;  %v352_v11 = vld [vmem:[%s871_s2] sm:$0xff]  ;;  %v354_v13 = vld [vmem:[%s871_s2 + $0x10] sm:$0xff]  ;;  %s618_s23 = scalar_lea.hbm %s617_s21, 32  ;;  %p623_p1 = scmp.lt.s32.totalorder %s617_s21, %s872_s3 }
  0x16   : > { %591 = vset.pattern.permute.xlu0 %v682_v0  ;;  %s526_s27 = sshll.u32 %s223_s26, 5  ;;  %v353_v12 = vld [vmem:[%s871_s2 + $0x8] sm:$0xff]  ;;  %v355_v14 = vld [vmem:[%s871_s2 + $0x18] sm:$0xff]  ;;  %v253_v32 = vand.u32 127, %v252_v30  ;;  %p619_p12 = scmp.ne.s32.totalorder %s617_s21, %s618_s23 }
  0x17   : > { %s229_s30 = scalar_lea.vmem %s869_s0, %s526_s27  ;;  %p624_p2 = scmp.lt.s32.totalorder %s622_s28, %s618_s23 }
  0x18   : > { %v769_v1 = vld [vmem:[%s229_s30 + $0x10] sm:$0xff]  ;;  %v771_v2 = vld [vmem:[%s229_s30] sm:$0xff]  ;;  %v776_v3 = vld [vmem:[%s229_s30 + $0x18] sm:$0xff]  ;;  %vm262_vm0 = vcmp.ge.s32.totalorder %v253_v32, 1  ;;  %vm275_vm1 = vcmp.le.s32.totalorder %v253_v32, 126  ;;  %p620_p13 = pnand %p619_p12, %p749_p4 }
  0x19   : > { %258 = vrot.lane.b32.xlu1 %v769_v1, %s683_s4  ;;  %267 = vrot.lane.b32.xlu2 %v771_v2, %s684_s5  ;;  %v778_v4 = vld [vmem:[%s229_s30 + $0x8] sm:$0xff]  ;;  %p625_p3 = por %p624_p2, %p623_p1 }
  0x1a   : > { %254 = vrot.lane.b32.xlu0 %v771_v2, %s683_s4  ;;  %p621_p0 = pneg %p620_p13 }
  0x1c   : > { %p626_p5 = pnand %p625_p3, %p621_p0 }
  0x21   : > { %260 = vrot.lane.b32.xlu1 %v776_v3, %s683_s4  ;;  %269 = vrot.lane.b32.xlu2 %v778_v4, %s684_s5 }
  0x22   : > { %256 = vrot.lane.b32.xlu0 %v778_v4, %s683_s4 }
  0x29   : > { %273 = vrot.lane.b32.xlu1 %v776_v3, %s684_s5  ;;  %282 = vperm.xlu2 %590, %v248_v5  }
  0x2a   : > { %271 = vrot.lane.b32.xlu0 %v769_v1, %s684_s5  ;;  %s218_s5 = sand.u32 1, %s664_s13  }
  0x2b   : > { %s518_s6 = sshll.u32 %s218_s5, 5  ;;  %s385_s15 = scalar_lea.sflag [#allocation3], %s218_s5 }
  0x2c   : > { %s820_s7 = scalar_lea.vmem [#allocation2], %s518_s6 }
  0x2d   : > { %s399_s18 = sshll.u32 %s820_s7, 4  ;;  %s400_s18 = int_to_ptr.vmem [resolvable:$true] %s399_s18 }
  0x31   : > { %292 = vperm.xlu1 %592, %v250_v6   ;;  %297 = vperm.xlu2 %590, %v251_v7  }
  0x32   : > { %287 = vperm.xlu0 %591, %v249_v8  }
  0x39   : > { %593 = vset.pattern.permute.xlu1 %v685_v9  ;;  %594 = vset.pattern.permute.xlu2 %v685_v9 }
  0x3a   : > { %595 = vset.pattern.permute.xlu0 %v685_v9  ;;  %305 = vperm.xlu1 %593, %v248_v5  }
  0x3b   : > { %309 = vperm.xlu2 %594, %v249_v8   ;;  %313 = vperm.xlu0 %595, %v250_v6  }
  0x42   : > { %317 = vperm.xlu1 %593, %v251_v7  }
  0x43   : > { %596 = vset.pattern.permute.xlu2 %v686_v10  ;;  %598 = vset.pattern.permute.xlu0 %v686_v10 }
  0x44   : > { %329 = vperm.xlu2 %596, %v248_v5   ;;  %341 = vperm.xlu0 %598, %v251_v7  }
  0x4a   : > { %597 = vset.pattern.permute.xlu1 %v686_v10 }
  0x4b   : > { %333 = vperm.xlu1 %597, %v249_v8  }
  0x4c   : > { %337 = vperm.xlu2 %596, %v250_v6   ;;  %601 = vset.pattern.permute.xlu0 %v682_v0 }
  0x53   : > { %599 = vset.pattern.permute.xlu1 %v682_v0 }
  0x54   : > { %358 = vperm.xlu1 %599, %v352_v11   ;;  %600 = vset.pattern.permute.xlu2 %v682_v0 }
  0x55   : > { %363 = vperm.xlu2 %600, %v353_v12  }
  0x5c   : > { %368 = vperm.xlu1 %599, %v354_v13  }
  0x5d   : > { %373 = vperm.xlu2 %600, %v355_v14  }
  0x73   : > { %v268_v15 = vpop.permute.xlu2 %267 }
  0x74   : > { %v276_v58 = vsel %vm275_vm1, %v268_v15, 0.0 }
  0x7b   : > { %v270_v16 = vpop.permute.xlu2 %269 }
  0x7c   : > { %v277_v50 = vsel %vm275_vm1, %v270_v16, 0.0 }
  0x83   : > { %v283_v17 = vpop.permute.xlu2 %282 }
  0x8b   : > { %v259_v18 = vpop.permute.xlu1 %258  ;;  %v298_v19 = vpop.permute.xlu2 %297 }
  0x8c   : > { %v255_v20 = vpop.permute.xlu0 %254  ;;  %v265_v63 = vsel %vm262_vm0, %v259_v18, 0.0 }
  0x8d   : > { %v263_v49 = vsel %vm262_vm0, %v255_v20, 0.0 }
  0x8e   : > { %v300_v55 = vmul.f32 %v283_v17, %v263_v49 }
  0x93   : > { %v261_v21 = vpop.permute.xlu1 %260 }
  0x94   : > { %v257_v22 = vpop.permute.xlu0 %256  ;;  %v266_v35 = vsel %vm262_vm0, %v261_v21, 0.0 }
  0x95   : > { %v310_v23 = vpop.permute.xlu2 %309  ;;  %v303_v37 = vmul.f32 %v298_v19, %v266_v35  ;;  %v264_v41 = vsel %vm262_vm0, %v257_v22, 0.0 }
  0x96   : > { %v321_v46 = vmul.f32 %v310_v23, %v778_v4 }
  0x9b   : > { %v274_v24 = vpop.permute.xlu1 %273 }
  0x9c   : > { %v272_v25 = vpop.permute.xlu0 %271  ;;  %v279_v39 = vsel %vm275_vm1, %v274_v24, 0.0 }
  0x9d   : > { %v278_v0 = vsel %vm275_vm1, %v272_v25, 0.0 }
  0x9e   : > { %v330_v26 = vpop.permute.xlu2 %329 }
  0x9f   : > { %v344_v60 = vmul.f32 %v330_v26, %v276_v58 }
  0xa3   : > { %v293_v27 = vpop.permute.xlu1 %292 }
  0xa4   : > { %v288_v28 = vpop.permute.xlu0 %287 }
  0xa5   : > { %v301_v47 = vmul.f32 %v288_v28, %v264_v41 }
  0xa6   : > { %v338_v29 = vpop.permute.xlu2 %337 }
  0xa7   : > { %v325_v53 = vadd.f32 %v321_v46, %v301_v47  ;;  %v346_v5 = vmul.f32 %v338_v29, %v278_v0 }
  0xac   : > { %v306_v31 = vpop.permute.xlu1 %305 }
  0xad   : > { %v314_v33 = vpop.permute.xlu0 %313  ;;  %v320_v51 = vmul.f32 %v306_v31, %v771_v2 }
  0xae   : > { %v322_v61 = vmul.f32 %v314_v33, %v769_v1 }
  0xaf   : > { %v364_v34 = vpop.permute.xlu2 %363  ;;  %v324_v57 = vadd.f32 %v320_v51, %v300_v55 }
  0xb1   : > { %v348_v62 = vadd.f32 %v344_v60, %v324_v57 }
  0xb4   : > { %v318_v36 = vpop.permute.xlu1 %317 }
  0xb5   : > { %v323_v38 = vmul.f32 %v318_v36, %v776_v3  ;;  %v302_v3 = vmul.f32 %v293_v27, %v265_v63 }
  0xb6   : > { %v342_v40 = vpop.permute.xlu0 %341 }
  0xb7   : > { %v327_v42 = vadd.f32 %v323_v38, %v303_v37  ;;  %v347_v43 = vmul.f32 %v342_v40, %v279_v39  ;;  %v374_v44 = vpop.permute.xlu2 %373  ;;  %v326_v6 = vadd.f32 %v322_v61, %v302_v3 }
  0xb9   : > { %v351_v45 = vadd.f32 %v347_v43, %v327_v42  ;;  %v350_v1 = vadd.f32 %v346_v5, %v326_v6 }
  0xbb   : > { %v379_v48 = vadd.f32 %v374_v44, %v351_v45 }
  0xbd   : > { %383 = vst [vmem:[%s820_s7 + $0x18] sm:$0xff] %v379_v48  ;;  %v334_v52 = vpop.permute.xlu1 %333 }
  0xbe   : > { %v345_v54 = vmul.f32 %v334_v52, %v277_v50 }
  0xc0   : > { %v349_v56 = vadd.f32 %v345_v54, %v325_v53 }
  0xc2   : > { %v377_v59 = vadd.f32 %v364_v34, %v349_v56 }
  0xc4   : > { %381 = vst [vmem:[%s820_s7 + $0x8] sm:$0xff] %v377_v59 }
  0xc6   : > { %v359_v2 = vpop.permute.xlu1 %358 }
  0xc7   : > { %v376_v4 = vadd.f32 %v359_v2, %v348_v62 }
  0xc9   : > { %380 = vst [vmem:[%s820_s7] sm:$0xff] %v376_v4 }
  0xce   : > { %v369_v7 = vpop.permute.xlu1 %368 }
  0xcf   : > { %v378_v8 = vadd.f32 %v369_v7, %v350_v1 }
  0xd1   : > { %382 = vst [vmem:[%s820_s7 + $0x10] sm:$0xff] %v378_v8 }
  0xd2   : > { %629 = shalt.err (!%p626_p5)
}
  0xd3   : > { %s687_s4 = smov 128   ;;  %s688_s5 = smov 8  }
  0xd4   : > { %528 = dma.vmem_to_hbm [thread:$0]  (%p749_p4), %s400_s18, 512, %s402_s19, %s385_s15, %s687_s4, %s687_s4, %s688_s5  }
  0xd5 PF: > { %p534_p6 = scmp.ge.s32.totalorder %s680_s17, 2  ;;  %s416_s6 = sand.u32 1, %s660_s12  }
  0xd6   : > { %s417_s7 = scalar_lea.sflag [#allocation3], %s416_s6 }
  0xd7   : > { %p531_p7 = pnand %p534_p6, %p756_p8 }
  0xd9   : > { %p532_p9 = pneg %p531_p7 }
  0xdb   : > { %655 = dma.done.wait (%p532_p9), %s417_s7, 512  }
  0xdc   : > { %657 = vsyncadd (%p532_p9), %s417_s7, 4294966784  ;;  %s16_s17 = sadd.s32 1, %s680_s17   ;;  %s875_s12 = smov %s664_s13 }
  0xdd   : > { %p13_p10 = scmp.ge.s32.totalorder %s16_s17, 4   ;;  %s876_s13 = smov %s668_s14 }
  0xde   : > { %s877_s14 = smov %s762_s25  ;;  %s878_s15 = smov %s676_s16 }
  0xdf   : > { %s879_s16 = smov %s881_s20  ;;  %15 = sbr.rel (!%p13_p10) target bundleno = 4 (0x4), region = 73 }
  0xe4   :  { %423 = vsyncpa [#allocation3], 1 }
  0xe5   :  { %425 = vsyncpa [#allocation3 + $0x1], 1 }

</bundles_post_ra>
